<compile_context>
chip_gen: v6e
topology: v6e:2x2x1
jax: 0.10.0
libtpu: 0.0.40
codegen_flags: <defaults>
</compile_context>

<pallas_src>
import functools

import jax
import jax.numpy as jnp
from jax.experimental import pallas as pl
from jax.experimental.pallas import tpu as pltpu

NEG_SLOPE = 0.01   # nn.LeakyReLU default
BN_EPS = 1e-5      # nn.BatchNorm2d default


# ----------------------------------------------------------------------------- kernel
def _depth_up_kernel(xe_ref, xc_ref, dcat_ref, p_ref, bu_ref,
                     a1_ref, s1_ref, b1_ref, a2_ref, s2_ref, b2_ref,
                     o_ref, *, ho):
    """Fused DepthUp forward for NB batch samples packed along the row (M) axis.

    xe_ref  : (NB*Hi, Wi*C_in)        x_expand rows, lane-flat NHWC, f32
    xc_ref  : (NB*Ho, Wo*C_skip)      x_copy rows,   lane-flat NHWC, f32
    dcat_ref: (Wi*C_in, 2*Wo*C_up)    merged even|odd ConvTranspose weights, bf16
    p_ref   : (2, NB*Ho, NB*Hi)       0/1 block-diag row-parity scatter, bf16
    bu_ref  : (1, Wo*C_up)            ConvTranspose bias (tiled over W), f32
    a1_ref  : (3, Wo*C_cat, Wo*C_mid) block-1 DSConv taps (up|skip K-concat), bf16
    s1/b1   : (1, Wo*C_mid)           block-1 BN scale / folded bias rows, f32
    a2_ref  : (3, Wo*C_mid, Wo*C_out) block-2 DSConv taps, bf16
    s2/b2   : (1, Wo*C_out)           block-2 BN scale / folded bias rows, f32
    o_ref   : (NB*Ho, Wo*C_out)       lane-dense output slab
    """
    f32, bf16 = jnp.float32, jnp.bfloat16
    m = o_ref.shape[0]                       # NB*Ho rows in this block
    c_up = bu_ref.shape[-1]                  # Wo*C_up lanes

    # Per-row masks marking each sample's top / bottom row (3x3 zero-pad halo).
    row = jax.lax.broadcasted_iota(jnp.int32, (m, 1), 0)
    rmod = row % ho
    not_top = rmod != 0
    not_bot = rmod != (ho - 1)

    def tap_sum(x_bf, taps_ref):
        # out[r] = x[r-1]@T0 + x[r]@T1 + x[r+1]@T2 with zero rows at sample edges.
        # The H-shift is applied to the matmul RESULTS (rows never mix in the lane
        # contraction), so the three dots share one bf16 LHS and the shifts ride
        # the otherwise-idle XLU slot instead of extra pad matmuls / 18-row slabs.
        c0 = jnp.dot(x_bf, taps_ref[0], preferred_element_type=f32)
        acc = jnp.dot(x_bf, taps_ref[1], preferred_element_type=f32)
        c2 = jnp.dot(x_bf, taps_ref[2], preferred_element_type=f32)
        acc = acc + jnp.where(not_top, pltpu.roll(c0, 1, 0), 0.0)        # row r-1
        acc = acc + jnp.where(not_bot, pltpu.roll(c2, m - 1, 0), 0.0)    # row r+1
        return acc

    def leaky(y):
        return jnp.where(y > 0.0, y, NEG_SLOPE * y)

    # --- ConvTranspose2d(k=2, s=2): one merged bf16 MXU matmul producing the even-
    #     and odd-row outputs side by side (2*Wo*C_up lanes), then a 0/1 row-parity
    #     scatter (block-diagonal per sample) written in accumulation form. --------
    xe_b = xe_ref[...].astype(bf16)                                       # (NB*Hi, Wi*C_in)
    t = jnp.dot(xe_b, dcat_ref[...], preferred_element_type=f32)          # (NB*Hi, 2*Wo*C_up)
    t_b = t.astype(bf16)
    up = jnp.dot(p_ref[0], t_b[:, :c_up], preferred_element_type=f32)
    up = up + jnp.dot(p_ref[1], t_b[:, c_up:], preferred_element_type=f32)
    up = up + bu_ref[...]                                                 # (NB*Ho, Wo*C_up) f32

    # --- channel concat [x_up | x_copy]: lane concat at a 128-aligned boundary. ----
    cat_b = jnp.concatenate([up.astype(bf16), xc_ref[...].astype(bf16)], axis=-1)

    # --- block 1: DSConv(3x3,pad=1) + BN + LeakyReLU, K = Wo*C_cat lanes -----------
    #     (f32 epilogue: separate BN scale row * acc + folded bias row)
    y1 = leaky(tap_sum(cat_b, a1_ref) * s1_ref[...] + b1_ref[...])

    # --- block 2 --------------------------------------------------------------------
    y2 = leaky(tap_sum(y1.astype(bf16), a2_ref) * s2_ref[...] + b2_ref[...])

    # Lane-dense store: full (NB*Ho, Wo*C_out) slab, no masked partial stores.
    o_ref[...] = y2.astype(o_ref.dtype)


# ----------------------------------------------------------------------------- wrapper
def _pick_block_n(n, ho, target_rows=128):
    """Pick NB samples per grid step so the matmul M dim approaches ~128 rows."""
    nb = max(1, min(n, max(1, target_rows // ho)))
    while n % nb:
        nb -= 1
    return nb


def depth_up_forward_flat(xe_flat, xc_flat, folded, *, Hi, Wi):
    """Lane-flat DepthUp: (N*Hi, Wi*C_in), (N*Ho, Wo*C_skip) -> (N*Ho, Wo*C_out)."""
    Ho = 2 * Hi
    n = xe_flat.shape[0] // Hi
    ki, ks = xe_flat.shape[-1], xc_flat.shape[-1]
    c_out_lanes = folded["b2"].shape[-1]

    nb = _pick_block_n(n, Ho)
    grid = (n // nb,)

    # Batch-blocked 0/1 parity scatter (block-diagonal: samples never mix), bf16-exact.
    pscat = jnp.stack([jnp.kron(jnp.eye(nb, dtype=jnp.float32), folded["p"][di])
                       for di in range(2)]).astype(jnp.bfloat16)          # (2, NB*Ho, NB*Hi)

    kernel = functools.partial(_depth_up_kernel, ho=Ho)

    def const(a):  # untiled parameter: same whole array every grid step
        return pl.BlockSpec(a.shape, lambda i, _nd=a.ndim: (0,) * _nd)

    return pl.pallas_call(
        kernel,
        out_shape=jax.ShapeDtypeStruct((n * Ho, c_out_lanes), xe_flat.dtype),
        grid=grid,
        in_specs=[
            pl.BlockSpec((nb * Hi, ki), lambda i: (i, 0)),
            pl.BlockSpec((nb * Ho, ks), lambda i: (i, 0)),
            const(folded["dcat"]), const(pscat), const(folded["bu"]),
            const(folded["a1"]), const(folded["s1"]), const(folded["b1"]),
            const(folded["a2"]), const(folded["s2"]), const(folded["b2"]),
        ],
        out_specs=pl.BlockSpec((nb * Ho, c_out_lanes), lambda i: (i, 0)),
        compiler_params=pltpu.CompilerParams(
            dimension_semantics=("parallel",),
            vmem_limit_bytes=64 * 1024 * 1024),
    )(xe_flat, xc_flat, folded["dcat"], pscat, folded["bu"],
      folded["a1"], folded["s1"], folded["b1"],
      folded["a2"], folded["s2"], folded["b2"])


def depth_up_forward(x_expand, x_copy, folded):
    """NCHW wrapper matching DepthUp.forward.  In a full U-Net, keep activations in
    the lane-flat (N*H, W*C) layout between layers and call depth_up_forward_flat
    directly — these transposes are HBM round-trips outside the kernel."""
    N, C_in, Hi, Wi = x_expand.shape
    _, C_skip, Ho, Wo = x_copy.shape
    C_out = folded["b2"].shape[-1] // Wo

    xe = jnp.transpose(x_expand, (0, 2, 3, 1)).reshape(N * Hi, Wi * C_in)
    xc = jnp.transpose(x_copy, (0, 2, 3, 1)).reshape(N * Ho, Wo * C_skip)
    out = depth_up_forward_flat(xe, xc, folded, Hi=Hi, Wi=Wi)
    return jnp.transpose(out.reshape(N, Ho, Wo, C_out), (0, 3, 1, 2))     # -> NCHW


# ------------------------------------------------------------------- host-side folding
def fold_params(raw, Hi, Wi):
    """Fold PyTorch-layout params into MXU-friendly constants (pure offline algebra).

    MXU operands (dcat, a1, a2, p) are produced in bf16; the BN scale and all biases
    stay f32 and are applied in the kernel's f32 epilogue."""
    Ho, Wo = 2 * Hi, 2 * Wi
    f32, bf16 = jnp.float32, jnp.bfloat16
    W_up, b_up = raw["up_w"], raw["up_b"]             # (C_in, C_up, 2, 2), (C_up,)
    C_in, C_up = W_up.shape[0], W_up.shape[1]

    # ConvTranspose2d(k=2, s=2): per row-parity di, kron(I_Wi, Wt_di) writes the
    # (dj, channel) outputs at their lane-flat (2w+dj)*C_up + c positions; the two
    # parities are merged along N so the kernel does one matmul.
    Wt = jnp.transpose(W_up, (2, 0, 3, 1)).reshape(2, C_in, 2 * C_up)   # [di](ci, dj*C_up+co)
    d = [jnp.kron(jnp.eye(Wi, dtype=f32), Wt[di]) for di in range(2)]   # (Wi*C_in, Wo*C_up)
    dcat = jnp.concatenate(d, axis=-1).astype(bf16)                     # (Wi*C_in, 2*Wo*C_up)

    # Per-sample row-parity scatter: (P[di] @ t) puts t's row h at output row 2h+di.
    p = jnp.stack([(jnp.arange(Ho)[:, None] == 2 * jnp.arange(Hi)[None, :] + di).astype(f32)
                   for di in range(2)])                                 # (2, Ho, Hi)
    bu = jnp.tile(b_up, Wo)[None, :].astype(f32)                        # (1, Wo*C_up)

    def w_shift(dj):   # S[w2, w] = 1 iff w2 == w + dj - 1  (encodes the W halo + pad)
        return (jnp.arange(Wo)[:, None] == jnp.arange(Wo)[None, :] + (dj - 1)).astype(f32)

    def fold_block_taps(blk, c_lo, c_hi):
        """3x3 depthwise taps x 1x1 pointwise for input channels [c_lo, c_hi).
        NOTE: BN scale is deliberately NOT folded in (kept as a separate f32 row)."""
        dw = jnp.transpose(blk["dw_w"][:, 0], (1, 2, 0))                # (3, 3, C)
        pw = jnp.transpose(blk["pw_w"][:, :, 0, 0], (1, 0))             # (C, C_next)
        return jnp.stack([
            sum(jnp.kron(w_shift(dj), dw[di, dj, c_lo:c_hi, None] * pw[c_lo:c_hi, :])
                for dj in range(3))
            for di in range(3)])                                        # (3, Wo*(c_hi-c_lo), Wo*C_next)

    def fold_block_scale_bias(blk):
        scale = blk["gamma"] / jnp.sqrt(blk["var"] + BN_EPS)
        pw = jnp.transpose(blk["pw_w"][:, :, 0, 0], (1, 0))
        bias = (blk["dw_b"] @ pw + blk["pw_b"]) * scale + blk["beta"] - blk["mean"] * scale
        return (jnp.tile(scale, Wo)[None, :].astype(f32),
                jnp.tile(bias, Wo)[None, :].astype(f32))                # (1, Wo*C_next) each

    blk1, blk2 = raw["blocks"]
    C_cat = blk1["dw_w"].shape[0]
    # Block-1 taps: up-channel taps and skip-channel taps concatenated along K, matching
    # the kernel's [x_up | x_copy] lane concat -> one K = Wo*C_cat matmul per tap.
    a1 = jnp.concatenate([fold_block_taps(blk1, 0, C_up),
                          fold_block_taps(blk1, C_up, C_cat)], axis=1).astype(bf16)
    s1, b1 = fold_block_scale_bias(blk1)
    a2 = fold_block_taps(blk2, 0, blk2["dw_w"].shape[0]).astype(bf16)
    s2, b2 = fold_block_scale_bias(blk2)
    return dict(dcat=dcat, p=p, bu=bu, a1=a1, s1=s1, b1=b1, a2=a2, s2=s2, b2=b2)


def init_raw_params(key, in_channels, out_channels):
    """Deterministic synthetic parameters in PyTorch layouts for DepthUp(in, out)."""
    ks = jax.random.split(key, 3)
    raw = {
        # nn.ConvTranspose2d(in, out, kernel_size=2, stride=2): weight (in, out, 2, 2)
        "up_w": 0.3 * jax.random.normal(ks[0], (in_channels, out_channels, 2, 2), jnp.float32),
        "up_b": 0.1 * jax.random.normal(ks[1], (out_channels,), jnp.float32),
        "blocks": [],
    }
    c = in_channels     # DepthDoubleConv input = concat(x_up, x_copy) = in_channels
    bkey = ks[2]
    for _ in range(2):
        bkey, *kk = jax.random.split(bkey, 9)
        raw["blocks"].append(dict(
            dw_w=0.3 * jax.random.normal(kk[0], (c, 1, 3, 3), jnp.float32),
            dw_b=0.1 * jax.random.normal(kk[1], (c,), jnp.float32),
            pw_w=0.3 * jax.random.normal(kk[2], (out_channels, c, 1, 1), jnp.float32),
            pw_b=0.1 * jax.random.normal(kk[3], (out_channels,), jnp.float32),
            gamma=1.0 + 0.1 * jax.random.normal(kk[4], (out_channels,), jnp.float32),
            beta=0.1 * jax.random.normal(kk[5], (out_channels,), jnp.float32),
            mean=0.1 * jax.random.normal(kk[6], (out_channels,), jnp.float32),
            var=jnp.abs(jax.random.normal(kk[7], (out_channels,), jnp.float32)) + 0.5,
        ))
        c = out_channels
    return raw


# ----------------------------------------------------------------------------- reference
def _reference(x_expand, x_copy, raw):
    """Pure-JAX (lax, f32) replica of DepthUp.forward, from the unfolded params."""
    W, b = raw["up_w"], raw["up_b"]
    N, _, Hi, Wi = x_expand.shape
    C_up = W.shape[1]
    # ConvTranspose2d(k=2, s=2): out[n,o,2h+kh,2w+kw] = sum_c x[n,c,h,w] W[c,o,kh,kw] + b[o]
    up = jnp.einsum("nchw,cokl->nohkwl", x_expand, W).reshape(N, C_up, 2 * Hi, 2 * Wi)
    up = up + b[None, :, None, None]
    x = jnp.concatenate([up, x_copy], axis=1)
    for blk in raw["blocks"]:
        C = blk["dw_w"].shape[0]
        xdw = jax.lax.conv_general_dilated(
            x, blk["dw_w"], window_strides=(1, 1), padding=((1, 1), (1, 1)),
            dimension_numbers=("NCHW", "OIHW", "NCHW"),
            feature_group_count=C) + blk["dw_b"][None, :, None, None]
        y = jnp.einsum("nchw,oc->nohw", xdw, blk["pw_w"][:, :, 0, 0]) \
            + blk["pw_b"][None, :, None, None]
        y = (y - blk["mean"][None, :, None, None]) \
            / jnp.sqrt(blk["var"][None, :, None, None] + BN_EPS) \
            * blk["gamma"][None, :, None, None] + blk["beta"][None, :, None, None]
        x = jnp.where(y > 0, y, NEG_SLOPE * y)
    return x


# ----------------------------------------------------------------------------- demo
if __name__ == "__main__":
    key = jax.random.PRNGKey(0)
    k1, k2, kp = jax.random.split(key, 3)

    N = 2
    IN_CH, OUT_CH = 16, 8        # DepthUp(in_channels=16, out_channels=8)
    HI = WI = 8                  # x_expand: (2,16,8,8) -> upsampled 16x16; x_copy: (2,8,16,16)
    x_expand = jax.random.normal(k1, (N, IN_CH, HI, WI), jnp.float32)
    x_copy = jax.random.normal(k2, (N, IN_CH - OUT_CH, 2 * HI, 2 * WI), jnp.float32)

    raw = init_raw_params(kp, IN_CH, OUT_CH)
    folded = fold_params(raw, HI, WI)

    out = jax.jit(depth_up_forward)(x_expand, x_copy, folded)
    out = jax.block_until_ready(out)
    assert out.shape == (N, OUT_CH, 2 * HI, 2 * WI), out.shape

    ref = _reference(x_expand, x_copy, raw)
    err = float(jnp.max(jnp.abs(out - ref)))
    rel = float(jnp.linalg.norm(out - ref) / (jnp.linalg.norm(ref) + 1e-12))
    # bf16 MXU operands with f32 accumulation (per perf review): expect O(1e-2)
    # absolute deviations vs the f32 reference; real layout/shift bugs would be O(1).
    assert err < 1e-1, ("max abs err", err)
    assert rel < 2.5e-2, ("rel fro err", rel)

    print("KERNEL_OK")
</pallas_src>

<mosaic_0001>
module attributes {stable_mosaic.version = 11 : i64} {
  func.func @_depth_up_kernel(%arg0: i32, %arg1: memref<16x128xf32, #tpu.memory_space<vmem>>, %arg2: memref<32x128xf32, #tpu.memory_space<vmem>>, %arg3: memref<128x256xbf16, #tpu.memory_space<vmem>>, %arg4: memref<2x32x16xbf16, #tpu.memory_space<vmem>>, %arg5: memref<1x128xf32, #tpu.memory_space<vmem>>, %arg6: memref<3x256x128xbf16, #tpu.memory_space<vmem>>, %arg7: memref<1x128xf32, #tpu.memory_space<vmem>>, %arg8: memref<1x128xf32, #tpu.memory_space<vmem>>, %arg9: memref<3x128x128xbf16, #tpu.memory_space<vmem>>, %arg10: memref<1x128xf32, #tpu.memory_space<vmem>>, %arg11: memref<1x128xf32, #tpu.memory_space<vmem>>, %arg12: memref<32x128xf32, #tpu.memory_space<vmem>>) attributes {dimension_semantics = [#tpu.dimension_semantics<parallel>], iteration_bounds = array<i64: 1>, scalar_prefetch = 0 : i64, scratch_operands = 0 : i64, tpu.core_type = #tpu.core_type<tc>, window_params = [{transform_indices = @transform_0, window_bounds = array<i64: 16, 128>}, {transform_indices = @transform_1, window_bounds = array<i64: 32, 128>}, {pipeline_mode = #tpu.pipeline_mode<synchronous>, transform_indices = @transform_2, window_bounds = array<i64: 128, 256>}, {pipeline_mode = #tpu.pipeline_mode<synchronous>, transform_indices = @transform_3, window_bounds = array<i64: 2, 32, 16>}, {pipeline_mode = #tpu.pipeline_mode<synchronous>, transform_indices = @transform_4, window_bounds = array<i64: 1, 128>}, {pipeline_mode = #tpu.pipeline_mode<synchronous>, transform_indices = @transform_5, window_bounds = array<i64: 3, 256, 128>}, {pipeline_mode = #tpu.pipeline_mode<synchronous>, transform_indices = @transform_6, window_bounds = array<i64: 1, 128>}, {pipeline_mode = #tpu.pipeline_mode<synchronous>, transform_indices = @transform_7, window_bounds = array<i64: 1, 128>}, {pipeline_mode = #tpu.pipeline_mode<synchronous>, transform_indices = @transform_8, window_bounds = array<i64: 3, 128, 128>}, {pipeline_mode = #tpu.pipeline_mode<synchronous>, transform_indices = @transform_9, window_bounds = array<i64: 1, 128>}, {pipeline_mode = #tpu.pipeline_mode<synchronous>, transform_indices = @transform_10, window_bounds = array<i64: 1, 128>}, {transform_indices = @transform_11, window_bounds = array<i64: 32, 128>}]} {
    %0 = tpu.iota {dimensions = array<i32: 0>} : vector<32x1xi32>
    %c16_i32 = arith.constant 16 : i32
    %c0_i32 = arith.constant 0 : i32
    %1 = arith.cmpi eq, %c16_i32, %c0_i32 : i32
    %c1_i32 = arith.constant 1 : i32
    %2 = arith.select %1, %c1_i32, %c16_i32 : i32
    %3 = vector.broadcast %2 : i32 to vector<32x1xi32>
    %4 = arith.remsi %0, %3 : vector<32x1xi32>
    %c0_i32_0 = arith.constant 0 : i32
    %5 = vector.broadcast %c0_i32_0 : i32 to vector<32x1xi32>
    %6 = arith.cmpi ne, %4, %5 : vector<32x1xi32>
    %c0_i32_1 = arith.constant 0 : i32
    %7 = vector.broadcast %c0_i32_1 : i32 to vector<32x1xi32>
    %8 = arith.cmpi slt, %4, %7 : vector<32x1xi32>
    %c0_i32_2 = arith.constant 0 : i32
    %9 = arith.cmpi slt, %2, %c0_i32_2 : i32
    %10 = vector.broadcast %9 : i1 to vector<32x1xi1>
    %11 = vector.broadcast %10 : vector<32x1xi1> to vector<32x1xi1>
    %12 = arith.xori %8, %11 : vector<32x1xi1>
    %13 = arith.andi %12, %6 : vector<32x1xi1>
    %14 = vector.broadcast %2 : i32 to vector<32x1xi32>
    %15 = arith.addi %4, %14 : vector<32x1xi32>
    %16 = arith.select %13, %15, %4 : vector<32x1xi1>, vector<32x1xi32>
    %c0_i32_3 = arith.constant 0 : i32
    %17 = vector.broadcast %c0_i32_3 : i32 to vector<32x1xi32>
    %18 = arith.cmpi ne, %16, %17 : vector<32x1xi32>
    %c15_i32 = arith.constant 15 : i32
    %19 = vector.broadcast %c15_i32 : i32 to vector<32x1xi32>
    %20 = arith.cmpi ne, %16, %19 : vector<32x1xi32>
    %c0 = arith.constant 0 : index
    %c0_4 = arith.constant 0 : index
    %21 = vector.load %arg1[%c0, %c0_4] : memref<16x128xf32, #tpu.memory_space<vmem>>, vector<16x128xf32>
    %22 = arith.truncf %21 : vector<16x128xf32> to vector<16x128xbf16>
    %c0_5 = arith.constant 0 : index
    %c0_6 = arith.constant 0 : index
    %23 = vector.load %arg3[%c0_5, %c0_6] : memref<128x256xbf16, #tpu.memory_space<vmem>>, vector<128x256xbf16>
    %cst = arith.constant dense<0.000000e+00> : vector<16x256xf32>
    %24 = tpu.matmul %22, %23, %cst {dimension_numbers = #tpu.dot_dimension_numbers<[1], [0], [0], [1], [0, 0, 1, 1], [], []>} : vector<16x128xbf16>, vector<128x256xbf16>, vector<16x256xf32> -> vector<16x256xf32>
    %25 = arith.truncf %24 : vector<16x256xf32> to vector<16x256xbf16>
    %c0_7 = arith.constant 0 : index
    %c0_8 = arith.constant 0 : index
    %c0_9 = arith.constant 0 : index
    %26 = vector.load %arg4[%c0_7, %c0_8, %c0_9] : memref<2x32x16xbf16, #tpu.memory_space<vmem>>, vector<1x32x16xbf16>
    %27 = vector.shape_cast %26 : vector<1x32x16xbf16> to vector<32x16xbf16>
    %28 = vector.extract_strided_slice %25 {offsets = [0, 0], sizes = [16, 128], strides = [1, 1]} : vector<16x256xbf16> to vector<16x128xbf16>
    %cst_10 = arith.constant dense<0.000000e+00> : vector<32x128xf32>
    %29 = tpu.matmul %27, %28, %cst_10 {dimension_numbers = #tpu.dot_dimension_numbers<[1], [0], [0], [1], [0, 0, 1, 1], [], []>} : vector<32x16xbf16>, vector<16x128xbf16>, vector<32x128xf32> -> vector<32x128xf32>
    %c1 = arith.constant 1 : index
    %c0_11 = arith.constant 0 : index
    %c0_12 = arith.constant 0 : index
    %30 = vector.load %arg4[%c1, %c0_11, %c0_12] : memref<2x32x16xbf16, #tpu.memory_space<vmem>>, vector<1x32x16xbf16>
    %31 = vector.shape_cast %30 : vector<1x32x16xbf16> to vector<32x16xbf16>
    %32 = vector.extract_strided_slice %25 {offsets = [0, 128], sizes = [16, 128], strides = [1, 1]} : vector<16x256xbf16> to vector<16x128xbf16>
    %cst_13 = arith.constant dense<0.000000e+00> : vector<32x128xf32>
    %33 = tpu.matmul %31, %32, %cst_13 {dimension_numbers = #tpu.dot_dimension_numbers<[1], [0], [0], [1], [0, 0, 1, 1], [], []>} : vector<32x16xbf16>, vector<16x128xbf16>, vector<32x128xf32> -> vector<32x128xf32>
    %34 = arith.addf %29, %33 : vector<32x128xf32>
    %c0_14 = arith.constant 0 : index
    %c0_15 = arith.constant 0 : index
    %35 = vector.load %arg5[%c0_14, %c0_15] : memref<1x128xf32, #tpu.memory_space<vmem>>, vector<1x128xf32>
    %36 = vector.broadcast %35 : vector<1x128xf32> to vector<32x128xf32>
    %37 = arith.addf %34, %36 : vector<32x128xf32>
    %38 = arith.truncf %37 : vector<32x128xf32> to vector<32x128xbf16>
    %c0_16 = arith.constant 0 : index
    %c0_17 = arith.constant 0 : index
    %39 = vector.load %arg2[%c0_16, %c0_17] : memref<32x128xf32, #tpu.memory_space<vmem>>, vector<32x128xf32>
    %40 = arith.truncf %39 : vector<32x128xf32> to vector<32x128xbf16>
    %41 = tpu.concatenate %38, %40 in 1 : vector<32x128xbf16>, vector<32x128xbf16> -> vector<32x256xbf16>
    %c0_18 = arith.constant 0 : index
    %c0_19 = arith.constant 0 : index
    %c0_20 = arith.constant 0 : index
    %42 = vector.load %arg6[%c0_18, %c0_19, %c0_20] : memref<3x256x128xbf16, #tpu.memory_space<vmem>>, vector<1x256x128xbf16>
    %43 = vector.shape_cast %42 : vector<1x256x128xbf16> to vector<256x128xbf16>
    %cst_21 = arith.constant dense<0.000000e+00> : vector<32x128xf32>
    %44 = tpu.matmul %41, %43, %cst_21 {dimension_numbers = #tpu.dot_dimension_numbers<[1], [0], [0], [1], [0, 0, 1, 1], [], []>} : vector<32x256xbf16>, vector<256x128xbf16>, vector<32x128xf32> -> vector<32x128xf32>
    %c1_22 = arith.constant 1 : index
    %c0_23 = arith.constant 0 : index
    %c0_24 = arith.constant 0 : index
    %45 = vector.load %arg6[%c1_22, %c0_23, %c0_24] : memref<3x256x128xbf16, #tpu.memory_space<vmem>>, vector<1x256x128xbf16>
    %46 = vector.shape_cast %45 : vector<1x256x128xbf16> to vector<256x128xbf16>
    %cst_25 = arith.constant dense<0.000000e+00> : vector<32x128xf32>
    %47 = tpu.matmul %41, %46, %cst_25 {dimension_numbers = #tpu.dot_dimension_numbers<[1], [0], [0], [1], [0, 0, 1, 1], [], []>} : vector<32x256xbf16>, vector<256x128xbf16>, vector<32x128xf32> -> vector<32x128xf32>
    %c2 = arith.constant 2 : index
    %c0_26 = arith.constant 0 : index
    %c0_27 = arith.constant 0 : index
    %48 = vector.load %arg6[%c2, %c0_26, %c0_27] : memref<3x256x128xbf16, #tpu.memory_space<vmem>>, vector<1x256x128xbf16>
    %49 = vector.shape_cast %48 : vector<1x256x128xbf16> to vector<256x128xbf16>
    %cst_28 = arith.constant dense<0.000000e+00> : vector<32x128xf32>
    %50 = tpu.matmul %41, %49, %cst_28 {dimension_numbers = #tpu.dot_dimension_numbers<[1], [0], [0], [1], [0, 0, 1, 1], [], []>} : vector<32x256xbf16>, vector<256x128xbf16>, vector<32x128xf32> -> vector<32x128xf32>
    %c1_i32_29 = arith.constant 1 : i32
    %51 = tpu.dynamic_rotate %44 by %c1_i32_29 dim 0 : vector<32x128xf32>, i32 -> vector<32x128xf32>
    %cst_30 = arith.constant 0.000000e+00 : f32
    %52 = vector.shape_cast %18 : vector<32x1xi1> to vector<32x1xi1>
    %53 = vector.broadcast %52 : vector<32x1xi1> to vector<32x128xi1>
    %54 = vector.broadcast %cst_30 : f32 to vector<32x128xf32>
    %55 = arith.select %53, %51, %54 : vector<32x128xi1>, vector<32x128xf32>
    %56 = arith.addf %47, %55 : vector<32x128xf32>
    %c31_i32 = arith.constant 31 : i32
    %57 = tpu.dynamic_rotate %50 by %c31_i32 dim 0 : vector<32x128xf32>, i32 -> vector<32x128xf32>
    %cst_31 = arith.constant 0.000000e+00 : f32
    %58 = vector.shape_cast %20 : vector<32x1xi1> to vector<32x1xi1>
    %59 = vector.broadcast %58 : vector<32x1xi1> to vector<32x128xi1>
    %60 = vector.broadcast %cst_31 : f32 to vector<32x128xf32>
    %61 = arith.select %59, %57, %60 : vector<32x128xi1>, vector<32x128xf32>
    %62 = arith.addf %56, %61 : vector<32x128xf32>
    %c0_32 = arith.constant 0 : index
    %c0_33 = arith.constant 0 : index
    %63 = vector.load %arg7[%c0_32, %c0_33] : memref<1x128xf32, #tpu.memory_space<vmem>>, vector<1x128xf32>
    %64 = vector.broadcast %63 : vector<1x128xf32> to vector<32x128xf32>
    %65 = arith.mulf %62, %64 : vector<32x128xf32>
    %c0_34 = arith.constant 0 : index
    %c0_35 = arith.constant 0 : index
    %66 = vector.load %arg8[%c0_34, %c0_35] : memref<1x128xf32, #tpu.memory_space<vmem>>, vector<1x128xf32>
    %67 = vector.broadcast %66 : vector<1x128xf32> to vector<32x128xf32>
    %68 = arith.addf %65, %67 : vector<32x128xf32>
    %cst_36 = arith.constant 0.000000e+00 : f32
    %69 = vector.broadcast %cst_36 : f32 to vector<32x128xf32>
    %70 = arith.cmpf ogt, %68, %69 : vector<32x128xf32>
    %cst_37 = arith.constant 0.00999999977 : f32
    %71 = vector.broadcast %cst_37 : f32 to vector<32x128xf32>
    %72 = arith.mulf %71, %68 : vector<32x128xf32>
    %73 = arith.select %70, %68, %72 : vector<32x128xi1>, vector<32x128xf32>
    %74 = arith.truncf %73 : vector<32x128xf32> to vector<32x128xbf16>
    %c0_38 = arith.constant 0 : index
    %c0_39 = arith.constant 0 : index
    %c0_40 = arith.constant 0 : index
    %75 = vector.load %arg9[%c0_38, %c0_39, %c0_40] : memref<3x128x128xbf16, #tpu.memory_space<vmem>>, vector<1x128x128xbf16>
    %76 = vector.shape_cast %75 : vector<1x128x128xbf16> to vector<128x128xbf16>
    %cst_41 = arith.constant dense<0.000000e+00> : vector<32x128xf32>
    %77 = tpu.matmul %74, %76, %cst_41 {dimension_numbers = #tpu.dot_dimension_numbers<[1], [0], [0], [1], [0, 0, 1, 1], [], []>} : vector<32x128xbf16>, vector<128x128xbf16>, vector<32x128xf32> -> vector<32x128xf32>
    %c1_42 = arith.constant 1 : index
    %c0_43 = arith.constant 0 : index
    %c0_44 = arith.constant 0 : index
    %78 = vector.load %arg9[%c1_42, %c0_43, %c0_44] : memref<3x128x128xbf16, #tpu.memory_space<vmem>>, vector<1x128x128xbf16>
    %79 = vector.shape_cast %78 : vector<1x128x128xbf16> to vector<128x128xbf16>
    %cst_45 = arith.constant dense<0.000000e+00> : vector<32x128xf32>
    %80 = tpu.matmul %74, %79, %cst_45 {dimension_numbers = #tpu.dot_dimension_numbers<[1], [0], [0], [1], [0, 0, 1, 1], [], []>} : vector<32x128xbf16>, vector<128x128xbf16>, vector<32x128xf32> -> vector<32x128xf32>
    %c2_46 = arith.constant 2 : index
    %c0_47 = arith.constant 0 : index
    %c0_48 = arith.constant 0 : index
    %81 = vector.load %arg9[%c2_46, %c0_47, %c0_48] : memref<3x128x128xbf16, #tpu.memory_space<vmem>>, vector<1x128x128xbf16>
    %82 = vector.shape_cast %81 : vector<1x128x128xbf16> to vector<128x128xbf16>
    %cst_49 = arith.constant dense<0.000000e+00> : vector<32x128xf32>
    %83 = tpu.matmul %74, %82, %cst_49 {dimension_numbers = #tpu.dot_dimension_numbers<[1], [0], [0], [1], [0, 0, 1, 1], [], []>} : vector<32x128xbf16>, vector<128x128xbf16>, vector<32x128xf32> -> vector<32x128xf32>
    %c1_i32_50 = arith.constant 1 : i32
    %84 = tpu.dynamic_rotate %77 by %c1_i32_50 dim 0 : vector<32x128xf32>, i32 -> vector<32x128xf32>
    %cst_51 = arith.constant 0.000000e+00 : f32
    %85 = vector.shape_cast %18 : vector<32x1xi1> to vector<32x1xi1>
    %86 = vector.broadcast %85 : vector<32x1xi1> to vector<32x128xi1>
    %87 = vector.broadcast %cst_51 : f32 to vector<32x128xf32>
    %88 = arith.select %86, %84, %87 : vector<32x128xi1>, vector<32x128xf32>
    %89 = arith.addf %80, %88 : vector<32x128xf32>
    %c31_i32_52 = arith.constant 31 : i32
    %90 = tpu.dynamic_rotate %83 by %c31_i32_52 dim 0 : vector<32x128xf32>, i32 -> vector<32x128xf32>
    %cst_53 = arith.constant 0.000000e+00 : f32
    %91 = vector.shape_cast %20 : vector<32x1xi1> to vector<32x1xi1>
    %92 = vector.broadcast %91 : vector<32x1xi1> to vector<32x128xi1>
    %93 = vector.broadcast %cst_53 : f32 to vector<32x128xf32>
    %94 = arith.select %92, %90, %93 : vector<32x128xi1>, vector<32x128xf32>
    %95 = arith.addf %89, %94 : vector<32x128xf32>
    %c0_54 = arith.constant 0 : index
    %c0_55 = arith.constant 0 : index
    %96 = vector.load %arg10[%c0_54, %c0_55] : memref<1x128xf32, #tpu.memory_space<vmem>>, vector<1x128xf32>
    %97 = vector.broadcast %96 : vector<1x128xf32> to vector<32x128xf32>
    %98 = arith.mulf %95, %97 : vector<32x128xf32>
    %c0_56 = arith.constant 0 : index
    %c0_57 = arith.constant 0 : index
    %99 = vector.load %arg11[%c0_56, %c0_57] : memref<1x128xf32, #tpu.memory_space<vmem>>, vector<1x128xf32>
    %100 = vector.broadcast %99 : vector<1x128xf32> to vector<32x128xf32>
    %101 = arith.addf %98, %100 : vector<32x128xf32>
    %cst_58 = arith.constant 0.000000e+00 : f32
    %102 = vector.broadcast %cst_58 : f32 to vector<32x128xf32>
    %103 = arith.cmpf ogt, %101, %102 : vector<32x128xf32>
    %cst_59 = arith.constant 0.00999999977 : f32
    %104 = vector.broadcast %cst_59 : f32 to vector<32x128xf32>
    %105 = arith.mulf %104, %101 : vector<32x128xf32>
    %106 = arith.select %103, %101, %105 : vector<32x128xi1>, vector<32x128xf32>
    %c0_60 = arith.constant 0 : index
    %c0_61 = arith.constant 0 : index
    %107 = vector.load %arg12[%c0_60, %c0_61] : memref<32x128xf32, #tpu.memory_space<vmem>>, vector<32x128xf32>
    tpu.vector_store %arg12[%c0_60, %c0_61], %106 {strides = array<i32>} : memref<32x128xf32, #tpu.memory_space<vmem>>, vector<32x128xf32>,
    return
  }
  func.func @transform_0(%arg0: i32) -> (i32, i32) {
    %c0_i32 = arith.constant 0 : i32
    %c0_i32_0 = arith.constant 0 : i32
    return %arg0, %c0_i32 : i32, i32
  }
  func.func @transform_1(%arg0: i32) -> (i32, i32) {
    %c0_i32 = arith.constant 0 : i32
    %c0_i32_0 = arith.constant 0 : i32
    return %arg0, %c0_i32 : i32, i32
  }
  func.func @transform_2(%arg0: i32) -> (i32, i32) {
    %c0_i32 = arith.constant 0 : i32
    %c0_i32_0 = arith.constant 0 : i32
    %c0_i32_1 = arith.constant 0 : i32
    return %c0_i32, %c0_i32_0 : i32, i32
  }
  func.func @transform_3(%arg0: i32) -> (i32, i32, i32) {
    %c0_i32 = arith.constant 0 : i32
    %c0_i32_0 = arith.constant 0 : i32
    %c0_i32_1 = arith.constant 0 : i32
    %c0_i32_2 = arith.constant 0 : i32
    return %c0_i32, %c0_i32_0, %c0_i32_1 : i32, i32, i32
  }
  func.func @transform_4(%arg0: i32) -> (i32, i32) {
    %c0_i32 = arith.constant 0 : i32
    %c0_i32_0 = arith.constant 0 : i32
    %c0_i32_1 = arith.constant 0 : i32
    return %c0_i32, %c0_i32_0 : i32, i32
  }
  func.func @transform_5(%arg0: i32) -> (i32, i32, i32) {
    %c0_i32 = arith.constant 0 : i32
    %c0_i32_0 = arith.constant 0 : i32
    %c0_i32_1 = arith.constant 0 : i32
    %c0_i32_2 = arith.constant 0 : i32
    return %c0_i32, %c0_i32_0, %c0_i32_1 : i32, i32, i32
  }
  func.func @transform_6(%arg0: i32) -> (i32, i32) {
    %c0_i32 = arith.constant 0 : i32
    %c0_i32_0 = arith.constant 0 : i32
    %c0_i32_1 = arith.constant 0 : i32
    return %c0_i32, %c0_i32_0 : i32, i32
  }
  func.func @transform_7(%arg0: i32) -> (i32, i32) {
    %c0_i32 = arith.constant 0 : i32
    %c0_i32_0 = arith.constant 0 : i32
    %c0_i32_1 = arith.constant 0 : i32
    return %c0_i32, %c0_i32_0 : i32, i32
  }
  func.func @transform_8(%arg0: i32) -> (i32, i32, i32) {
    %c0_i32 = arith.constant 0 : i32
    %c0_i32_0 = arith.constant 0 : i32
    %c0_i32_1 = arith.constant 0 : i32
    %c0_i32_2 = arith.constant 0 : i32
    return %c0_i32, %c0_i32_0, %c0_i32_1 : i32, i32, i32
  }
  func.func @transform_9(%arg0: i32) -> (i32, i32) {
    %c0_i32 = arith.constant 0 : i32
    %c0_i32_0 = arith.constant 0 : i32
    %c0_i32_1 = arith.constant 0 : i32
    return %c0_i32, %c0_i32_0 : i32, i32
  }
  func.func @transform_10(%arg0: i32) -> (i32, i32) {
    %c0_i32 = arith.constant 0 : i32
    %c0_i32_0 = arith.constant 0 : i32
    %c0_i32_1 = arith.constant 0 : i32
    return %c0_i32, %c0_i32_0 : i32, i32
  }
  func.func @transform_11(%arg0: i32) -> (i32, i32) {
    %c0_i32 = arith.constant 0 : i32
    %c0_i32_0 = arith.constant 0 : i32
    return %arg0, %c0_i32 : i32, i32
  }
}

</mosaic_0001>

<bundles_post_ra>
// kernel: depth_up_forward.1
= control target key start
LH: loop header
LB: loop body
LE: loop exit
PB: predicated region body
PF: predicated region fallthrough
CT: control target
= control target key end

     0   :  { %v1923_v1 = vmov 0   ;;  %vm263_vm0 = vcmask 130048   ;;  %s2392_s2 = inlined_call_operand.vmem [shape: bf16[128,256], index: 2, kind: input, shape index: {}]   ;;  %s2393_s0 = inlined_call_operand.vmem [shape: f32[16,128], index: 0, kind: input, shape index: {}]   ;;  %s2394_s3 = inlined_call_operand.vmem [shape: bf16[2,32,16], index: 3, kind: input, shape index: {}]   ;;  %s2395_s5 = inlined_call_operand.vmem [shape: bf16[3,256,128], index: 5, kind: input, shape index: {}]   ;;  %s2396_s1 = inlined_call_operand.vmem [shape: f32[32,128], index: 1, kind: input, shape index: {}]   ;;  %s2397_s4 = inlined_call_operand.vmem [shape: f32[1,128], index: 4, kind: input, shape index: {}]   ;;  %s2398_s8 = inlined_call_operand.vmem [shape: bf16[3,128,128], index: 8, kind: input, shape index: {}]   ;;  %s2399_s6 = inlined_call_operand.vmem [shape: f32[1,128], index: 6, kind: input, shape index: {}]   ;;  %s2400_s7 = inlined_call_operand.vmem [shape: f32[1,128], index: 7, kind: input, shape index: {}]   ;;  %s2401_s9 = inlined_call_operand.vmem [shape: f32[1,128], index: 9, kind: input, shape index: {}]   ;;  %s2402_s10 = inlined_call_operand.vmem [shape: f32[1,128], index: 10, kind: input, shape index: {}]   ;;  %s2403_s11 = inlined_call_operand.vmem [shape: f32[32,128], index: 11, kind: output, shape index: {}]  }
   0x1   :  { %v1823_v0 = vld [vmem:[%s2392_s2 + $0x74] ss:$8 sps:$4 sm:$0xff]   ;;  %231 = vmatprep.mubr.bf16.mxu0 %v1923_v1  ;;  %v1825_v2 = vld [vmem:[%s2392_s2 + $0x70] ss:$8 sps:$4 sm:$0xff]   ;;  %v1826_v3 = vld [vmem:[%s2392_s2 + $0x64] ss:$8 sps:$4 sm:$0xff]  }
   0x2   :  { %199 = vmatprep.subr.bf16.mxu0 %v1823_v0  ;;  %v1828_v4 = vld [vmem:[%s2392_s2 + $0x60] ss:$8 sps:$4 sm:$0xff]   ;;  %v1829_v5 = vld [vmem:[%s2392_s2 + $0x54] ss:$8 sps:$4 sm:$0xff]   ;;  %v1831_v6 = vld [vmem:[%s2392_s2 + $0x50] ss:$8 sps:$4 sm:$0xff]  }
   0x3   :  { %200 = vmatpush1.bf16.msra.mxu0 %v1825_v2  ;;  %v1832_v7 = vld [vmem:[%s2392_s2 + $0x44] ss:$8 sps:$4 sm:$0xff]   ;;  %v1834_v8 = vld [vmem:[%s2392_s2 + $0x40] ss:$8 sps:$4 sm:$0xff]   ;;  %v1835_v9 = vld [vmem:[%s2392_s2 + $0x34] ss:$8 sps:$4 sm:$0xff]  }
   0x4   :  { %201 = vmatprep.subr.bf16.mxu0 %v1826_v3  ;;  %v1837_v10 = vld [vmem:[%s2392_s2 + $0x30] ss:$8 sps:$4 sm:$0xff]   ;;  %v1838_v11 = vld [vmem:[%s2392_s2 + $0x24] ss:$8 sps:$4 sm:$0xff]   ;;  %v1840_v12 = vld [vmem:[%s2392_s2 + $0x20] ss:$8 sps:$4 sm:$0xff]  }
   0x5   :  { %v1841_v13 = vld [vmem:[%s2392_s2 + $0x14] ss:$8 sps:$4 sm:$0xff]   ;;  %v1843_v14 = vld [vmem:[%s2392_s2 + $0x10] ss:$8 sps:$4 sm:$0xff]   ;;  %v1844_v15 = vld [vmem:[%s2392_s2 + $0x4] ss:$8 sps:$4 sm:$0xff]  }
   0x6   :  { %v1846_v16 = vld [vmem:[%s2392_s2] ss:$8 sps:$4 sm:$0xff]   ;;  %v1847_v20 = vld [vmem:[%s2394_s3 + $0x10] sm:$0xff]   ;;  %v1853_v21 = vld [vmem:[%s2395_s5 + $0x178] sm:$0xff]  }
   0x7   :  { %202 = vmatpush1.bf16.msra.mxu0 %v1828_v4  ;;  %v100_v17 = vld [vmem:[%s2393_s0] sm:$0xff]  ;;  %v101_v18 = vld [vmem:[%s2393_s0 + $0x8] sm:$0xff]  ;;  %1752 = vmatprep.mubr.msk.bf16.mxu1 %vm263_vm0, %v1847_v20  ;;  %v1854_v22 = vld [vmem:[%s2395_s5 + $0x138] sm:$0xff]  }
   0x8   :  { %203 = vmatprep.subr.bf16.mxu0 %v1829_v5  ;;  %v102_v19 = vpack.c.bf16 %v101_v18, %v100_v17  ;;  %v1857_v23 = vld [vmem:[%s2395_s5 + $0x170] sm:$0xff]   ;;  %v1861_v25 = vld [vmem:[%s2395_s5 + $0x168] sm:$0xff]   ;;  %v1848_v33 = vld [vmem:[%s2394_s3 + $0x18] sm:$0xff]  }
   0x9   :  { %v1858_v24 = vld [vmem:[%s2395_s5 + $0x130] sm:$0xff]   ;;  %v1862_v26 = vld [vmem:[%s2395_s5 + $0x128] sm:$0xff]   ;;  %v1849_v34 = vld [vmem:[%s2394_s3] sm:$0xff]  }
   0xa   :  { %v1851_v35 = vld [vmem:[%s2395_s5 + $0x78] sm:$0xff]   ;;  %v1850_v36 = vld [vmem:[%s2394_s3 + $0x8] sm:$0xff]   ;;  %v1855_v38 = vld [vmem:[%s2395_s5 + $0x70] sm:$0xff]  }
   0xb   :  { %204 = vmatpush1.bf16.msra.mxu0 %v1831_v6  ;;  %v1852_v37 = vld [vmem:[%s2395_s5 + $0x38] sm:$0xff]   ;;  %v1856_v39 = vld [vmem:[%s2395_s5 + $0x30] sm:$0xff]   ;;  %v1859_v40 = vld [vmem:[%s2395_s5 + $0x68] sm:$0xff]  }
   0xc   :  { %205 = vmatprep.subr.bf16.mxu0 %v1832_v7  ;;  %v1860_v41 = vld [vmem:[%s2395_s5 + $0x28] sm:$0xff]   ;;  %v1863_v42 = vld [vmem:[%s2395_s5 + $0x60] sm:$0xff]   ;;  %v1867_v46 = vld [vmem:[%s2395_s5 + $0x58] sm:$0xff]  }
   0xd   :  { %v1864_v43 = vld [vmem:[%s2395_s5 + $0x20] sm:$0xff]   ;;  %v1868_v47 = vld [vmem:[%s2395_s5 + $0x18] sm:$0xff]   ;;  %v1871_v50 = vld [vmem:[%s2395_s5 + $0x50] sm:$0xff]  }
   0xe   :  { %v1865_v44 = vld [vmem:[%s2395_s5 + $0x160] sm:$0xff]   ;;  %v1869_v48 = vld [vmem:[%s2395_s5 + $0x158] sm:$0xff]   ;;  %v1872_v51 = vld [vmem:[%s2395_s5 + $0x10] sm:$0xff]  }
   0xf   :  { %206 = vmatpush1.bf16.msra.mxu0 %v1834_v8  ;;  %v1866_v45 = vld [vmem:[%s2395_s5 + $0x120] sm:$0xff]   ;;  %v1870_v49 = vld [vmem:[%s2395_s5 + $0x118] sm:$0xff]   ;;  %v1873_v52 = vld [vmem:[%s2395_s5 + $0x150] sm:$0xff]  }
  0x10   :  { %207 = vmatprep.subr.bf16.mxu0 %v1835_v9  ;;  %v1874_v53 = vld [vmem:[%s2395_s5 + $0x110] sm:$0xff]   ;;  %v1875_v54 = vld [vmem:[%s2395_s5 + $0x48] sm:$0xff]   ;;  %v1879_v58 = vld [vmem:[%s2395_s5 + $0x40] sm:$0xff]  }
  0x11   :  { %v1876_v55 = vld [vmem:[%s2395_s5 + $0x8] sm:$0xff]   ;;  %v1880_v59 = vld [vmem:[%s2395_s5] sm:$0xff]   ;;  %v1883_v1 = vld [vmem:[%s2395_s5 + $0xf8] sm:$0xff]  }
  0x12   :  { %v1877_v56 = vld [vmem:[%s2395_s5 + $0x148] sm:$0xff]   ;;  %v1881_v60 = vld [vmem:[%s2395_s5 + $0x140] sm:$0xff]   ;;  %v1884_v17 = vld [vmem:[%s2395_s5 + $0xb8] sm:$0xff]  }
  0x13   :  { %208 = vmatpush1.bf16.msra.mxu0 %v1837_v10  ;;  %v1878_v57 = vld [vmem:[%s2395_s5 + $0x108] sm:$0xff]   ;;  %v1882_v61 = vld [vmem:[%s2395_s5 + $0x100] sm:$0xff]  }
  0x14   :  { %209 = vmatprep.subr.bf16.mxu0 %v1838_v11  ;;  %v397_v62 = vld [vmem:[%s2396_s1] sm:$0xff]  ;;  %v398_v63 = vld [vmem:[%s2396_s1 + $0x8] sm:$0xff] }
  0x15   :  { %v401_v0 = vpack.c.bf16 %v398_v63, %v397_v62 }
  0x17   :  { %210 = vmatpush1.bf16.msra.mxu0 %v1840_v12  ;;  %v399_v12 = vld [vmem:[%s2396_s1 + $0x10] sm:$0xff] }
  0x18   :  { %211 = vmatprep.subr.bf16.mxu0 %v1841_v13  ;;  %v400_v13 = vld [vmem:[%s2396_s1 + $0x18] sm:$0xff] }
  0x19   :  { %v402_v18 = vpack.c.bf16 %v400_v13, %v399_v12 }
  0x1b   :  { %212 = vmatpush1.bf16.msra.mxu0 %v1843_v14  ;;  %v1457_v14 = vld [vmem:[%s2397_s4] ss:$0 sm:$0xff] }
  0x1c   :  { %213 = vmatprep.subr.bf16.mxu0 %v1844_v15 }
  0x1f   :  { %214 = vmatpush1.bf16.msra.mxu0 %v1846_v16 }
  0x20   :  { %1664 = vmatprep.subr.bf16.mxu0 %v1853_v21  ;;  %v1885_v21 = vld [vmem:[%s2395_s5 + $0xf0] sm:$0xff]  }
  0x22   :  { %232 = vmatmul.mubr.bf16.vlgmr.msra.gmra.mxu0 %v102_v19 }
  0x23   :  { %1665 = vmatpush3.bf16.msra.mxu0 %v1854_v22  ;;  %774 = vmatprep.mubr.bf16.mxu0 %v401_v0 }
  0x24   :  { %1666 = vmatprep.subr.bf16.mxu0 %v1857_v23  ;;  %v1886_v23 = vld [vmem:[%s2395_s5 + $0xb0] sm:$0xff]  }
  0x27   :  { %1667 = vmatpush3.bf16.msra.mxu0 %v1858_v24 }
  0x28   :  { %1668 = vmatprep.subr.bf16.mxu0 %v1861_v25  ;;  %v1887_v25 = vld [vmem:[%s2395_s5 + $0xe8] sm:$0xff]  }
  0x2b   :  { %1669 = vmatpush3.bf16.msra.mxu0 %v1862_v26 }
  0x2c   :  { %1670 = vmatprep.subr.bf16.mxu0 %v1865_v44  ;;  %v1904_v44 = vld [vmem:[%s2398_s8 + $0xa8] sm:$0xff]  }
  0x2f   :  { %1671 = vmatpush3.bf16.msra.mxu0 %v1866_v45  ;;  %v1905_v45 = vld [vmem:[%s2398_s8 + $0x20] sm:$0xff]  }
  0x30   :  { %1672 = vmatprep.subr.bf16.mxu0 %v1869_v48  ;;  %v1908_v48 = vld [vmem:[%s2398_s8 + $0x98] sm:$0xff]  }
  0x33   :  { %1673 = vmatpush3.bf16.msra.mxu0 %v1870_v49  ;;  %v1909_v49 = vld [vmem:[%s2398_s8 + $0x10] sm:$0xff]  }
  0x34   :  { %1674 = vmatprep.subr.bf16.mxu0 %v1873_v52  ;;  %v1912_v52 = vld [vmem:[%s2398_s8 + $0x88] sm:$0xff]  }
  0x37   :  { %1675 = vmatpush3.bf16.msra.mxu0 %v1874_v53  ;;  %v1913_v53 = vld [vmem:[%s2398_s8] sm:$0xff]  }
  0x38   :  { %1676 = vmatprep.subr.bf16.mxu0 %v1877_v56 }
  0x3b   :  { %1677 = vmatpush3.bf16.msra.mxu0 %v1878_v57 }
  0x3c   :  { %1678 = vmatprep.subr.bf16.mxu0 %v1881_v60 }
  0x3f   :  { %1679 = vmatpush3.bf16.msra.mxu0 %v1882_v61 }
  0xe2   :  { %v233_v27 = vpop.f32.mrf.mxu0 }
  0xe4   :  { %v235_v28 = vpop.f32.mrf.mxu0 }
  0xe6   :  { %v237_v29 = vpop.f32.mrf.mxu0 }
  0xe7   :  { %v242_v32 = vpack.c.bf16 %v237_v29, %v233_v27  ;;  %v1888_v27 = vld [vmem:[%s2395_s5 + $0xa8] sm:$0xff]   ;;  %v1889_v29 = vld [vmem:[%s2395_s5 + $0xe0] sm:$0xff]  }
  0xe8   :  { %v239_v30 = vpop.f32.mrf.mxu0 }
  0xe9   :  { %v243_v31 = vpack.c.bf16 %v239_v30, %v235_v28  ;;  %v1890_v30 = vld [vmem:[%s2395_s5 + $0xa0] sm:$0xff]  }
  0xeb   :  { %1750 = vmatprep.subr.bf16.mxu1 %v243_v31 }
  0xec   :  { %1751 = vmatpush3.bf16.msra.mxu1 %v243_v31  ;;  %v1891_v31 = vld [vmem:[%s2395_s5 + $0xd8] sm:$0xff]  }
  0xed   :  { %1756 = vmatprep.subr.bf16.mxu1 %v242_v32 }
  0xef   :  { %1753 = vmatmul.mubr.msk.bf16.vlgmr.msra.gmra.mxu1 %vm263_vm0, %v1848_v33  ;;  %v1893_v33 = vld [vmem:[%s2395_s5 + $0xd0] sm:$0xff]  }
  0xf0   :  { %1757 = vmatpush3.bf16.msra.mxu1 %v242_v32  ;;  %1758 = vmatprep.mubr.msk.bf16.mxu1 %vm263_vm0, %v1849_v34  ;;  %v1892_v32 = vld [vmem:[%s2395_s5 + $0x98] sm:$0xff]   ;;  %v1894_v34 = vld [vmem:[%s2395_s5 + $0x90] sm:$0xff]  }
  0xf1   :  { %1636 = vmatprep.subr.bf16.mxu1 %v1851_v35  ;;  %v1895_v35 = vld [vmem:[%s2395_s5 + $0xc8] sm:$0xff]  }
  0xf7   :  { %1759 = vmatmul.mubr.msk.bf16.vlgmr.msra.gmra.mxu1 %vm263_vm0, %v1850_v36  ;;  %v1896_v36 = vld [vmem:[%s2395_s5 + $0x88] sm:$0xff]  }
  0xf8   :  { %1637 = vmatpush3.bf16.msra.mxu1 %v1852_v37  ;;  %563 = vmatprep.mubr.bf16.mxu1 %v401_v0  ;;  %v1897_v37 = vld [vmem:[%s2395_s5 + $0xc0] sm:$0xff]  }
  0xf9   :  { %1638 = vmatprep.subr.bf16.mxu1 %v1855_v38  ;;  %v1898_v38 = vld [vmem:[%s2395_s5 + $0x80] sm:$0xff]  }
  0xfc   :  { %1639 = vmatpush3.bf16.msra.mxu1 %v1856_v39  ;;  %v1899_v39 = vld [vmem:[%s2398_s8 + $0x38] sm:$0xff]  }
  0xfd   :  { %1640 = vmatprep.subr.bf16.mxu1 %v1859_v40  ;;  %v1900_v40 = vld [vmem:[%s2398_s8 + $0xb8] sm:$0xff]   ;;  %1762 = vmatprep.subr.bf16.mxu0 %v1899_v39 }
 0x100   :  { %1641 = vmatpush3.bf16.msra.mxu1 %v1860_v41  ;;  %v1901_v41 = vld [vmem:[%s2398_s8 + $0x30] sm:$0xff]  }
 0x101   :  { %1642 = vmatprep.subr.bf16.mxu1 %v1863_v42  ;;  %v1902_v42 = vld [vmem:[%s2398_s8 + $0xb0] sm:$0xff]  }
 0x104   :  { %1643 = vmatpush3.bf16.msra.mxu1 %v1864_v43  ;;  %v1903_v43 = vld [vmem:[%s2398_s8 + $0x28] sm:$0xff]  }
 0x105   :  { %1644 = vmatprep.subr.bf16.mxu1 %v1867_v46  ;;  %v1906_v46 = vld [vmem:[%s2398_s8 + $0xa0] sm:$0xff]  }
 0x108   :  { %1645 = vmatpush3.bf16.msra.mxu1 %v1868_v47  ;;  %v1907_v47 = vld [vmem:[%s2398_s8 + $0x18] sm:$0xff]  }
 0x109   :  { %1646 = vmatprep.subr.bf16.mxu1 %v1871_v50  ;;  %v1910_v50 = vld [vmem:[%s2398_s8 + $0x90] sm:$0xff]  }
 0x10c   :  { %1647 = vmatpush3.bf16.msra.mxu1 %v1872_v51  ;;  %v1911_v51 = vld [vmem:[%s2398_s8 + $0x8] sm:$0xff]  }
 0x10d   :  { %1648 = vmatprep.subr.bf16.mxu1 %v1875_v54  ;;  %v1914_v54 = vld [vmem:[%s2398_s8 + $0x80] sm:$0xff]  }
 0x110   :  { %1649 = vmatpush3.bf16.msra.mxu1 %v1876_v55  ;;  %v2264_v55 = vld [vmem:[%s2398_s8 + $0x78] sm:$0xff]  }
 0x111   :  { %1650 = vmatprep.subr.bf16.mxu1 %v1879_v58 }
 0x114   :  { %1651 = vmatpush3.bf16.msra.mxu1 %v1880_v59 }
 0x115   :  { %1692 = vmatprep.subr.bf16.mxu1 %v1883_v1 }
 0x1af   :  { %v1754_v2 = vpop.f32.mrf.mxu1 }
 0x1b1   :  { %v304_v3 = vpop.f32.mrf.mxu1 }
 0x1b3   :  { %v1755_v4 = vpop.f32.mrf.mxu1 }
 0x1b5   :  { %v307_v5 = vpop.f32.mrf.mxu1 }
 0x1b7   :  { %v1760_v6 = vpop.f32.mrf.mxu1 }
 0x1b8   :  { %v378_v22 = vadd.f32 %v1760_v6, %v1754_v2 }
 0x1b9   :  { %v369_v7 = vpop.f32.mrf.mxu1 }
 0x1ba   :  { %v370_v9 = vadd.f32 %v369_v7, %v304_v3  ;;  %v393_v26 = vadd.f32 %v1457_v14, %v378_v22 }
 0x1bb   :  { %v1761_v8 = vpop.f32.mrf.mxu1 }
 0x1bc   :  { %v391_v15 = vadd.f32 %v1457_v14, %v370_v9  ;;  %v381_v19 = vadd.f32 %v1761_v8, %v1755_v4 }
 0x1bd   :  { %v372_v10 = vpop.f32.mrf.mxu1 }
 0x1be   :  { %v373_v11 = vadd.f32 %v372_v10, %v307_v5  ;;  %v394_v24 = vadd.f32 %v1457_v14, %v381_v19  ;;  %v39_v5 = vlaneseq }
 0x1c0   :  { %v392_v16 = vadd.f32 %v1457_v14, %v373_v11  ;;  %v396_v28 = vpack.c.bf16 %v394_v24, %v393_v26  ;;  %v2269_v8 = vshrl.u32 %v39_v5, 7 }
 0x1c2   :  { %v395_v20 = vpack.c.bf16 %v392_v16, %v391_v15  ;;  %v48_v11 = vand.u32 15, %v2269_v8  ;;  %v41_v16 = vadd.s32 8, %v2269_v8  ;;  %vm795_vm1 = vcmp.lt.s32.totalorder %v2269_v8, 1 }
 0x1c3   :  { %vm961_vm3 = vcmp.lt.s32.totalorder %v2269_v8, 7 }
 0x1c4   :  { %564 = vmatmul.mubr.bf16.vlgmr.msra.gmra.mxu1 %v395_v20  ;;  %775 = vmatmul.mubr.bf16.vlgmr.msra.gmra.mxu0 %v395_v20  ;;  %vm2275_vm2 = vcmp.ne.s32.totalorder %v48_v11, 0 }
 0x1c5   :  { %1693 = vmatpush3.bf16.msra.mxu1 %v1884_v17  ;;  %571 = vmatprep.mubr.bf16.mxu1 %v402_v18 }
 0x1c6   :  { %1694 = vmatprep.subr.bf16.mxu1 %v1885_v21  ;;  %782 = vmatprep.mubr.bf16.mxu0 %v402_v18 }
 0x1c7   :  { %1763 = vmatpush3.bf16.msra.mxu0 %v1899_v39  ;;  %v1570_v39 = vld [vmem:[%s2399_s6] ss:$0 sm:$0xff] }
 0x1c8   :  { %1764 = vmatprep.subr.bf16.mxu0 %v1901_v41 }
 0x1c9   :  { %1695 = vmatpush3.bf16.msra.mxu1 %v1886_v23  ;;  %v42_v23 = vadd.s32 16, %v2269_v8 }
 0x1ca   :  { %1696 = vmatprep.subr.bf16.mxu1 %v1887_v25 }
 0x1cb   :  { %1765 = vmatpush3.bf16.msra.mxu0 %v1901_v41  ;;  %v43_v41 = vadd.s32 24, %v2269_v8 }
 0x1cc   :  { %572 = vmatmul.mubr.bf16.gmra.mxu1 %v396_v28  ;;  %783 = vmatmul.mubr.bf16.gmra.mxu0 %v396_v28 }
 0x1cd   :  { %1697 = vmatpush3.bf16.msra.mxu1 %v1888_v27  ;;  %940 = vmatprep.mubr.bf16.mxu1 %v401_v0 }
 0x1ce   :  { %1698 = vmatprep.subr.bf16.mxu1 %v1889_v29  ;;  %1766 = vmatprep.subr.bf16.mxu0 %v1903_v43  ;;  %v55_v29 = vand.u32 15, %v41_v16 }
 0x1cf   :  { %1767 = vmatpush3.bf16.msra.mxu0 %v1903_v43 }
 0x1d0   :  { %1768 = vmatprep.subr.bf16.mxu0 %v1905_v45  ;;  %vm2295_vm4 = vcmp.ne.s32.totalorder %v55_v29, 15  ;;  %v1917_v29 = vld [vmem:[%s2398_s8 + $0x68] sm:$0xff]  }
 0x1d1   :  { %1699 = vmatpush3.bf16.msra.mxu1 %v1890_v30 }
 0x1d2   :  { %1700 = vmatprep.subr.bf16.mxu1 %v1891_v31 }
 0x1d3   :  { %1769 = vmatpush3.bf16.msra.mxu0 %v1905_v45 }
 0x1d4   :  { %1770 = vmatprep.subr.bf16.mxu0 %v1907_v47 }
 0x1d5   :  { %1701 = vmatpush3.bf16.msra.mxu1 %v1892_v32 }
 0x1d6   :  { %1702 = vmatprep.subr.bf16.mxu1 %v1893_v33 }
 0x1d7   :  { %1771 = vmatpush3.bf16.msra.mxu0 %v1907_v47 }
 0x1d8   :  { %1772 = vmatprep.subr.bf16.mxu0 %v1909_v49 }
 0x1d9   :  { %1703 = vmatpush3.bf16.msra.mxu1 %v1894_v34 }
 0x1da   :  { %1704 = vmatprep.subr.bf16.mxu1 %v1895_v35 }
 0x1db   :  { %1773 = vmatpush3.bf16.msra.mxu0 %v1909_v49 }
 0x1dc   :  { %1774 = vmatprep.subr.bf16.mxu0 %v1911_v51 }
 0x1dd   :  { %1705 = vmatpush3.bf16.msra.mxu1 %v1896_v36  ;;  %v62_v36 = vand.u32 15, %v42_v23 }
 0x1de   :  { %1706 = vmatprep.subr.bf16.mxu1 %v1897_v37 }
 0x1df   :  { %1775 = vmatpush3.bf16.msra.mxu0 %v1911_v51  ;;  %vm2304_vm5 = vcmp.ne.s32.totalorder %v62_v36, 0 }
 0x1e0   :  { %1776 = vmatprep.subr.bf16.mxu0 %v1913_v53 }
 0x1e1   :  { %1707 = vmatpush3.bf16.msra.mxu1 %v1898_v38 }
 0x1e2   :  { %1782 = vmatprep.subr.bf16.mxu1 %v1900_v40 }
 0x1e3   :  { %1777 = vmatpush3.bf16.msra.mxu0 %v1913_v53 }
 0x1e4   :  { %941 = vmatmul.mubr.bf16.vlgmr.msra.gmra.mxu1 %v395_v20  ;;  %1802 = vmatprep.subr.bf16.mxu0 %v2264_v55 }
 0x1e5   :  { %948 = vmatprep.mubr.bf16.mxu1 %v402_v18  ;;  %1783 = vmatpush3.bf16.msra.mxu1 %v1900_v40 }
 0x1e6   :  { %1784 = vmatprep.subr.bf16.mxu1 %v1902_v42 }
 0x1e9   :  { %1785 = vmatpush3.bf16.msra.mxu1 %v1902_v42 }
 0x1ea   :  { %1786 = vmatprep.subr.bf16.mxu1 %v1904_v44 }
 0x1ec   :  { %949 = vmatmul.mubr.bf16.gmra.mxu1 %v396_v28 }
 0x1ed   :  { %1787 = vmatpush3.bf16.msra.mxu1 %v1904_v44 }
 0x1ee   :  { %1788 = vmatprep.subr.bf16.mxu1 %v1906_v46 }
 0x1f1   :  { %1789 = vmatpush3.bf16.msra.mxu1 %v1906_v46  ;;  %v1571_v46 = vld [vmem:[%s2400_s7] ss:$0 sm:$0xff] }
 0x1f2   :  { %1790 = vmatprep.subr.bf16.mxu1 %v1908_v48 }
 0x1f5   :  { %1791 = vmatpush3.bf16.msra.mxu1 %v1908_v48 }
 0x1f6   :  { %1792 = vmatprep.subr.bf16.mxu1 %v1910_v50 }
 0x1f9   :  { %1793 = vmatpush3.bf16.msra.mxu1 %v1910_v50 }
 0x1fa   :  { %1794 = vmatprep.subr.bf16.mxu1 %v1912_v52 }
 0x1fd   :  { %1795 = vmatpush3.bf16.msra.mxu1 %v1912_v52 }
 0x1fe   :  { %1796 = vmatprep.subr.bf16.mxu1 %v1914_v54 }
 0x201   :  { %1797 = vmatpush3.bf16.msra.mxu1 %v1914_v54 }
 0x284   :  { %v1652_v56 = vpop.f32.mrf.mxu1  ;;  %v1680_v60 = vpop.f32.mrf.mxu0 }
 0x286   :  { %v1653_v57 = vpop.f32.mrf.mxu1  ;;  %v1681_v62 = vpop.f32.mrf.mxu0 }
 0x287   :  { %v1654_v7 = vadd.f32 %v1653_v57, %v1652_v56  ;;  %v1682_v17 = vadd.f32 %v1681_v62, %v1680_v60  ;;  %v69_v57 = vand.u32 15, %v43_v41 }
 0x288   :  { %v1655_v58 = vpop.f32.mrf.mxu1  ;;  %v1683_v0 = vpop.f32.mrf.mxu0 }
 0x289   :  { %v791_v13 = vrot.slane %v1654_v7, 7  ;;  %v957_v30 = vrot.slane %v1682_v17, 1  ;;  %vm2318_vm6 = vcmp.ne.s32.totalorder %v69_v57, 15 }
 0x28a   :  { %v1656_v59 = vpop.f32.mrf.mxu1  ;;  %v1684_v2 = vpop.f32.mrf.mxu0 }
 0x28b   :  { %v1685_v12 = vadd.f32 %v1684_v2, %v1683_v0  ;;  %v1657_v18 = vadd.f32 %v1656_v59, %v1655_v58 }
 0x28c   :  { %v1658_v61 = vpop.f32.mrf.mxu1  ;;  %v1686_v4 = vpop.f32.mrf.mxu0 }
 0x28d   :  { %v958_v24 = vrot.slane %v1685_v12, 1  ;;  %v792_v31 = vrot.slane %v1657_v18, 7 }
 0x28e   :  { %v1659_v63 = vpop.f32.mrf.mxu1  ;;  %v1687_v9 = vpop.f32.mrf.mxu0 }
 0x28f   :  { %v1688_v14 = vadd.f32 %v1687_v9, %v1686_v4  ;;  %v1660_v20 = vadd.f32 %v1659_v63, %v1658_v61  ;;  %v964_v38 = vsel %vm961_vm3, %v957_v30, %v958_v24  ;;  %v798_v47 = vsel %vm795_vm1, %v791_v13, %v792_v31 }
 0x290   :  { %v1661_v1 = vpop.f32.mrf.mxu1  ;;  %v1689_v15 = vpop.f32.mrf.mxu0 }
 0x291   :  { %v959_v26 = vrot.slane %v1688_v14, 1  ;;  %v793_v34 = vrot.slane %v1660_v20, 7 }
 0x292   :  { %v1662_v3 = vpop.f32.mrf.mxu1  ;;  %v1690_v27 = vpop.f32.mrf.mxu0 }
 0x293   :  { %v2267_v6 = vadd.f32 %v1662_v3, %v1661_v1  ;;  %v1691_v37 = vadd.f32 %v1690_v27, %v1689_v15  ;;  %v963_v42 = vsel %vm961_vm3, %v958_v24, %v959_v26  ;;  %v797_v52 = vsel %vm795_vm1, %v792_v31, %v793_v34  ;;  %v1919_v31 = vld [vmem:[%s2398_s8 + $0x58] sm:$0xff]  }
 0x294   :  { %v975_v54 = vsel %vm2295_vm4, %v963_v42, 0.0  ;;  %v810_v61 = vsel %vm2304_vm5, %v797_v52, 0.0 }
 0x295   :  { %v794_v10 = vrot.slane %v2267_v6, 7  ;;  %v960_v53 = vrot.slane %v1691_v37, 1 }
 0x297   :  { %v799_v22 = vsel %vm795_vm1, %v794_v10, %v791_v13  ;;  %v965_v1 = vsel %vm961_vm3, %v960_v53, %v957_v30  ;;  %v962_v2 = vsel %vm961_vm3, %v959_v26, %v960_v53  ;;  %v796_v12 = vsel %vm795_vm1, %v793_v34, %v794_v10  ;;  %v1918_v30 = vld [vmem:[%s2398_s8 + $0x60] sm:$0xff]  }
 0x298   :  { %v808_v32 = vsel %vm2275_vm2, %v799_v22, 0.0  ;;  %v977_v16 = vsel %vm2318_vm6, %v965_v1, 0.0 }
 0x2a4   :  { %v1708_v19 = vpop.f32.mrf.mxu1 }
 0x2a6   :  { %v1709_v25 = vpop.f32.mrf.mxu1 }
 0x2a7   :  { %v1710_v28 = vadd.f32 %v1709_v25, %v1708_v19 }
 0x2a8   :  { %v1711_v33 = vpop.f32.mrf.mxu1 }
 0x2a9   :  { %v943_v35 = vadd.f32 %v1710_v28, %v808_v32  ;;  %v1916_v28 = vld [vmem:[%s2398_s8 + $0x70] sm:$0xff]   ;;  %v1921_v32 = vld [vmem:[%s2398_s8 + $0x48] sm:$0xff]  }
 0x2aa   :  { %v1712_v40 = vpop.f32.mrf.mxu1 }
 0x2ab   :  { %v978_v43 = vadd.f32 %v964_v38, %v943_v35  ;;  %v1713_v45 = vadd.f32 %v1712_v40, %v1711_v33  ;;  %v1922_v33 = vld [vmem:[%s2398_s8 + $0x40] sm:$0xff]  }
 0x2ac   :  { %v1714_v48 = vpop.f32.mrf.mxu1 }
 0x2ad   :  { %v989_v49 = vmul.f32 %v1570_v39, %v978_v43  ;;  %v946_v50 = vadd.f32 %v1713_v45, %v798_v47 }
 0x2ae   :  { %v1715_v56 = vpop.f32.mrf.mxu1 }
 0x2af   :  { %v1000_v58 = vadd.f32 %v1571_v46, %v989_v49  ;;  %v979_v59 = vadd.f32 %v975_v54, %v946_v50  ;;  %v1716_v60 = vadd.f32 %v1715_v56, %v1714_v48 }
 0x2b0   :  { %v1717_v62 = vpop.f32.mrf.mxu1 }
 0x2b1   :  { %v990_v63 = vmul.f32 %v1570_v39, %v979_v59  ;;  %v951_v0 = vadd.f32 %v1716_v60, %v810_v61  ;;  %v1008_v11 = vmul.f32 0.01, %v1000_v58  ;;  %vm1004_vm7 = vcmp.gt.f32.partialorder %v1000_v58, 0.0  ;;  %v1628_v59 = vld [vmem:[%s2401_s9] ss:$0 sm:$0xff] }
 0x2b2   :  { %v1718_v4 = vpop.f32.mrf.mxu1 }
 0x2b3   :  { %v1001_v5 = vadd.f32 %v1571_v46, %v990_v63  ;;  %v980_v7 = vadd.f32 %v962_v2, %v951_v0  ;;  %v1719_v9 = vadd.f32 %v1718_v4, %v1717_v62  ;;  %v1012_v19 = vsel %vm1004_vm7, %v1000_v58, %v1008_v11  ;;  %v1629_v0 = vld [vmem:[%s2402_s10] ss:$0 sm:$0xff] }
 0x2b5   :  { %v991_v13 = vmul.f32 %v1570_v39, %v980_v7  ;;  %v954_v14 = vadd.f32 %v1719_v9, %v796_v12  ;;  %vm1005_vm8 = vcmp.gt.f32.partialorder %v1001_v5, 0.0  ;;  %v1009_v15 = vmul.f32 0.01, %v1001_v5 }
 0x2b7   :  { %v1002_v17 = vadd.f32 %v1571_v46, %v991_v13  ;;  %v981_v18 = vadd.f32 %v977_v16, %v954_v14  ;;  %v1013_v20 = vsel %vm1005_vm8, %v1001_v5, %v1009_v15 }
 0x2b8   :  { %v1016_v22 = vpack.c.bf16 %v1013_v20, %v1012_v19 }
 0x2b9   :  { %v992_v23 = vmul.f32 %v1570_v39, %v981_v18  ;;  %v1010_v6 = vmul.f32 0.01, %v1002_v17  ;;  %vm1006_vm9 = vcmp.gt.f32.partialorder %v1002_v17, 0.0 }
 0x2ba   :  { %1778 = vmatprep.mubr.bf16.mxu0 %v1016_v22  ;;  %1798 = vmatprep.mubr.bf16.mxu1 %v1016_v22 }
 0x2bb   :  { %v1003_v24 = vadd.f32 %v1571_v46, %v992_v23  ;;  %v1014_v25 = vsel %vm1006_vm9, %v1002_v17, %v1010_v6 }
 0x2bd   :  { %vm1007_vm10 = vcmp.gt.f32.partialorder %v1003_v24, 0.0  ;;  %v1011_v10 = vmul.f32 0.01, %v1003_v24 }
 0x2bf   :  { %v1015_v26 = vsel %vm1007_vm10, %v1003_v24, %v1011_v10 }
 0x2c0   :  { %v1017_v27 = vpack.c.bf16 %v1015_v26, %v1014_v25 }
 0x2c2   :  { %1779 = vmatmul.mubr.bf16.vlgmr.msra.gmra.mxu0 %v1017_v27  ;;  %1799 = vmatmul.mubr.bf16.vlgmr.msra.gmra.mxu1 %v1017_v27 }
 0x2c3   :  { %1803 = vmatpush3.bf16.msra.mxu0 %v2264_v55  ;;  %1818 = vmatprep.mubr.bf16.mxu0 %v1016_v22  ;;  %v1920_v55 = vld [vmem:[%s2398_s8 + $0x50] sm:$0xff]  }
 0x2c4   :  { %1804 = vmatprep.subr.bf16.mxu0 %v1916_v28 }
 0x2c7   :  { %1805 = vmatpush3.bf16.msra.mxu0 %v1916_v28 }
 0x2c8   :  { %1806 = vmatprep.subr.bf16.mxu0 %v1917_v29 }
 0x2cb   :  { %1807 = vmatpush3.bf16.msra.mxu0 %v1917_v29 }
 0x2cc   :  { %1808 = vmatprep.subr.bf16.mxu0 %v1918_v30 }
 0x2cf   :  { %1809 = vmatpush3.bf16.msra.mxu0 %v1918_v30 }
 0x2d0   :  { %1810 = vmatprep.subr.bf16.mxu0 %v1919_v31 }
 0x2d3   :  { %1811 = vmatpush3.bf16.msra.mxu0 %v1919_v31 }
 0x2d4   :  { %1812 = vmatprep.subr.bf16.mxu0 %v1920_v55 }
 0x2d7   :  { %1813 = vmatpush3.bf16.msra.mxu0 %v1920_v55 }
 0x2d8   :  { %1814 = vmatprep.subr.bf16.mxu0 %v1921_v32 }
 0x2db   :  { %1815 = vmatpush3.bf16.msra.mxu0 %v1921_v32 }
 0x2dc   :  { %1816 = vmatprep.subr.bf16.mxu0 %v1922_v33 }
 0x2df   :  { %1817 = vmatpush3.bf16.msra.mxu0 %v1922_v33 }
 0x2e2   :  { %1819 = vmatmul.mubr.bf16.vlgmr.msra.gmra.mxu0 %v1017_v27 }
 0x382   :  { %v1780_v34 = vpop.f32.mrf.mxu0  ;;  %v1800_v36 = vpop.f32.mrf.mxu1 }
 0x383   :  { %v1264_v42 = vrot.slane %v1780_v34, 7  ;;  %v1373_v50 = vrot.slane %v1800_v36, 1 }
 0x384   :  { %v1116_v35 = vpop.f32.mrf.mxu0  ;;  %v1247_v38 = vpop.f32.mrf.mxu1 }
 0x385   :  { %v1262_v45 = vrot.slane %v1116_v35, 7  ;;  %v1371_v56 = vrot.slane %v1247_v38, 1 }
 0x386   :  { %v1781_v37 = vpop.f32.mrf.mxu0  ;;  %v1801_v40 = vpop.f32.mrf.mxu1 }
 0x387   :  { %v1265_v43 = vrot.slane %v1781_v37, 7  ;;  %v1374_v48 = vrot.slane %v1801_v40, 1 }
 0x388   :  { %v1119_v39 = vpop.f32.mrf.mxu0  ;;  %v1250_v46 = vpop.f32.mrf.mxu1 }
 0x389   :  { %v1263_v41 = vrot.slane %v1119_v39, 7  ;;  %v1269_v49 = vsel %vm795_vm1, %v1265_v43, %v1262_v45  ;;  %v1372_v52 = vrot.slane %v1250_v46, 1  ;;  %v1375_v58 = vsel %vm961_vm3, %v1373_v50, %v1374_v48 }
 0x38a   :  { %v1270_v60 = vsel %vm2275_vm2, %v1269_v49, 0.0  ;;  %v1378_v51 = vsel %vm961_vm3, %v1374_v48, %v1371_v56  ;;  %v1266_v2 = vsel %vm795_vm1, %v1264_v42, %v1265_v43 }
 0x38b   :  { %v1267_v47 = vsel %vm795_vm1, %v1263_v41, %v1264_v42  ;;  %v1377_v1 = vsel %vm961_vm3, %v1371_v56, %v1372_v52  ;;  %v1376_v21 = vsel %vm961_vm3, %v1372_v52, %v1373_v50  ;;  %v1382_v11 = vsel %vm2318_vm6, %v1378_v51, 0.0 }
 0x38c   :  { %v1272_v53 = vsel %vm2304_vm5, %v1267_v47, 0.0  ;;  %v1268_v12 = vsel %vm795_vm1, %v1262_v45, %v1263_v41  ;;  %v1380_v18 = vsel %vm2295_vm4, %v1376_v21, 0.0 }
 0x3a2   :  { %v1820_v54 = vpop.f32.mrf.mxu0 }
 0x3a3   :  { %v1365_v57 = vadd.f32 %v1820_v54, %v1272_v53 }
 0x3a4   :  { %v1356_v61 = vpop.f32.mrf.mxu0 }
 0x3a5   :  { %v1385_v62 = vadd.f32 %v1375_v58, %v1365_v57  ;;  %v1357_v63 = vadd.f32 %v1356_v61, %v1270_v60 }
 0x3a6   :  { %v1821_v4 = vpop.f32.mrf.mxu0 }
 0x3a7   :  { %v1396_v5 = vmul.f32 %v1628_v59, %v1385_v62  ;;  %v1383_v7 = vadd.f32 %v1377_v1, %v1357_v63  ;;  %v1368_v9 = vadd.f32 %v1821_v4, %v1266_v2 }
 0x3a8   :  { %v1359_v13 = vpop.f32.mrf.mxu0 }
 0x3a9   :  { %v1407_v14 = vadd.f32 %v1629_v0, %v1396_v5  ;;  %v1394_v15 = vmul.f32 %v1628_v59, %v1383_v7  ;;  %v1386_v16 = vadd.f32 %v1382_v11, %v1368_v9  ;;  %v1360_v17 = vadd.f32 %v1359_v13, %v1268_v12 }
 0x3ab   :  { %vm1411_vm11 = vcmp.gt.f32.partialorder %v1407_v14, 0.0  ;;  %v1415_v19 = vmul.f32 0.01, %v1407_v14  ;;  %v1405_v20 = vadd.f32 %v1629_v0, %v1394_v15  ;;  %v1397_v22 = vmul.f32 %v1628_v59, %v1386_v16 }
 0x3ac   :  { %v1384_v23 = vadd.f32 %v1380_v18, %v1360_v17 }
 0x3ad   :  { %v1419_v6 = vsel %vm1411_vm11, %v1407_v14, %v1415_v19  ;;  %vm1409_vm12 = vcmp.gt.f32.partialorder %v1405_v20, 0.0  ;;  %v1413_v3 = vmul.f32 0.01, %v1405_v20  ;;  %v1408_v24 = vadd.f32 %v1629_v0, %v1397_v22 }
 0x3ae   :  { %1423 = vst [vmem:[%s2403_s11 + $0x10] sm:$0xff] %v1419_v6  ;;  %v1395_v8 = vmul.f32 %v1628_v59, %v1384_v23 }
 0x3af   :  { %v1417_v10 = vsel %vm1409_vm12, %v1405_v20, %v1413_v3  ;;  %vm1412_vm13 = vcmp.gt.f32.partialorder %v1408_v24, 0.0  ;;  %v1416_v25 = vmul.f32 0.01, %v1408_v24 }
 0x3b0   :  { %1421 = vst [vmem:[%s2403_s11] sm:$0xff] %v1417_v10  ;;  %v1406_v44 = vadd.f32 %v1629_v0, %v1395_v8 }
 0x3b1   :  { %v1420_v26 = vsel %vm1412_vm13, %v1408_v24, %v1416_v25 }
 0x3b2   :  { %1424 = vst [vmem:[%s2403_s11 + $0x18] sm:$0xff] %v1420_v26  ;;  %vm1410_vm14 = vcmp.gt.f32.partialorder %v1406_v44, 0.0  ;;  %v1414_v27 = vmul.f32 0.01, %v1406_v44 }
 0x3b4   :  { %v1418_v28 = vsel %vm1410_vm14, %v1406_v44, %v1414_v27 }
 0x3b5   :  { %1422 = vst [vmem:[%s2403_s11 + $0x8] sm:$0xff] %v1418_v28 }

</bundles_post_ra>
